<compile_context>
chip_gen: v5e
topology: v5e:2x2
jax: 0.10.0
libtpu: 0.0.40
codegen_flags: <defaults>
</compile_context>

<pallas_src>
import functools

import jax
import jax.numpy as jnp
from jax import lax
from jax.experimental import pallas as pl
from jax.experimental.pallas import tpu as pltpu

KH = KW = 3  # conv kernel size (stride 1, padding 1)


# ----------------------------------------------------------------------------
# Fused kernel: conv3x3 + bias + ReLU + global-avg-pool + NHC linear heads
# ----------------------------------------------------------------------------
def _sela_fused_kernel(x_ref, band_ref, cb_ref, hw_ref, hb_ref, o_ref, *,
                       tile_n, h_out):
    # x_ref   : [tile_n*H, KH*(W+2)*C]  bf16, kh-shifted row copies concat on lanes
    # band_ref: [KH*(W+2)*C, W*OC]      bf16 banded conv weight (kh, kw, c folded)
    # cb_ref  : [1, W*OC]               f32 conv bias tiled along w
    # hw_ref  : [W*OC, NKP]             f32 heads fused with 1/(H*W), lane-padded
    # hb_ref  : [1, NKP]                f32
    # o_ref   : [1, tile_n, NKP]        f32
    acc = jnp.dot(x_ref[...], band_ref[...],
                  preferred_element_type=jnp.float32)        # [tile_n*H, W*OC]
    acc = jnp.maximum(acc + cb_ref[...], 0.0)                # bias + ReLU (f32)
    wo = acc.shape[-1]
    # Global average pool: sum over h here (sublane reduce); the sum over w and
    # the 1/(H*W) scale are folded into hw_ref.
    hs = jnp.sum(acc.reshape(tile_n, h_out, wo), axis=1)     # [tile_n, W*OC]
    o_ref[0] = (jnp.dot(hs, hw_ref[...], preferred_element_type=jnp.float32)
                + hb_ref[...])


def _band_conv_weight(conv_w, w_out):
    """OIHW conv weight [OC,C,KH,KW] -> banded [KH*(W+KW-1)*C, W*OC].

    B[kh*(WP*C) + w_in*C + c, w*OC + oc] = conv_w[oc, c, kh, w_in - w]
    (zero where w_in - w is outside [0, KW)).
    """
    oc, c, kh, kw = conv_w.shape
    wp = w_out + kw - 1
    wt = conv_w.transpose(2, 3, 1, 0)                          # [KH, KW, C, OC]
    d = jnp.arange(wp)[:, None] - jnp.arange(w_out)[None, :]   # w_in - w
    valid = (d >= 0) & (d < kw)
    g = wt[:, jnp.clip(d, 0, kw - 1), :, :]                    # [KH, WP, W, C, OC]
    g = g * valid[None, :, :, None, None].astype(wt.dtype)
    g = g.transpose(0, 1, 3, 2, 4)                             # [KH, WP, C, W, OC]
    return g.reshape(kh * wp * c, w_out * oc)


# ----------------------------------------------------------------------------
# Wrapper: layout prep (tiny, one-off) + the single pallas_call
# ----------------------------------------------------------------------------
@functools.partial(jax.jit, static_argnames=("max_tile_n",))
def sela_forward(x_nchw, params, *, max_tile_n=128):
    """Forward pass of SelaModel; returns a list of NHC per-head logits."""
    conv_w = params["conv_w"]     # [OC, C, 3, 3]  (PyTorch OIHW)
    conv_b = params["conv_b"]     # [OC]
    head_w = params["head_w"]     # [NHC, OC, K]
    head_b = params["head_b"]     # [NHC, 1, K]

    n, c, h, w = x_nchw.shape
    oc = conv_w.shape[0]
    nhc, _, k = head_w.shape

    # Batch tile: as large as allowed, but never swallowing the whole batch so
    # the grid has >=2 "parallel" steps (both TensorCores busy on v7x).
    tile_n = int(max(1, min(max_tile_n, -(-n // 2))))
    n_pad = pl.cdiv(n, tile_n) * tile_n
    num_tiles = n_pad // tile_n

    wpc = (w + KW - 1) * c            # (padded-w, c) per-kh contraction block = 72
    kwpc = KH * wpc                   # full contraction dim = 216
    wo = w * oc                       # lane-dense conv row width = 512
    nk = nhc * k                      # 30 head logits
    nkp = pl.cdiv(nk, 128) * 128      # lane-padded output width = 128

    # ---- XLA-side layout prep (one-off, no 9x im2col; ~3x raw input) --------
    x_nhwc = x_nchw.transpose(0, 2, 3, 1)
    x_pad = jnp.pad(x_nhwc, ((0, n_pad - n), (1, 1), (1, 1), (0, 0)))
    # kh-shifted copies concatenated along the last (lane) dim -> K = 216.
    shifts = [x_pad[:, kh:kh + h, :, :].reshape(n_pad, h, wpc)
              for kh in range(KH)]
    x_p = jnp.concatenate(shifts, axis=-1).reshape(n_pad * h, kwpc)
    x_p = x_p.astype(jnp.bfloat16)

    band = _band_conv_weight(conv_w, w).astype(jnp.bfloat16)  # [216, W*OC]
    cb = jnp.tile(conv_b, (w,)).reshape(1, wo)                 # bias per (w, oc)
    # All heads as one matmul; fold sum-over-w and the 1/(H*W) pool scale in;
    # pad the 30-wide output up to 128 lanes (lane-dense stores).
    hw = head_w.transpose(1, 0, 2).reshape(oc, nk)
    hw2 = jnp.tile(hw, (w, 1)) * (1.0 / (h * w))               # [W*OC, NHC*K]
    hw_pad = jnp.zeros((wo, nkp), jnp.float32).at[:, :nk].set(hw2)
    hb_pad = jnp.zeros((1, nkp), jnp.float32).at[:, :nk].set(head_b.reshape(1, nk))

    # Note: the in-kernel reshape (tile_n*H, W*OC) -> (tile_n, H, W*OC) is
    # layout-preserving while H is a multiple of 8 (H=16 here).
    kernel = functools.partial(_sela_fused_kernel, tile_n=tile_n, h_out=h)
    out = pl.pallas_call(
        kernel,
        grid=(num_tiles,),
        out_shape=jax.ShapeDtypeStruct((num_tiles, tile_n, nkp), jnp.float32),
        in_specs=[
            pl.BlockSpec((tile_n * h, kwpc), lambda i: (i, 0)),   # batch-tiled
            pl.BlockSpec((kwpc, wo), lambda i: (0, 0)),           # VMEM-resident
            pl.BlockSpec((1, wo), lambda i: (0, 0)),
            pl.BlockSpec((wo, nkp), lambda i: (0, 0)),
            pl.BlockSpec((1, nkp), lambda i: (0, 0)),
        ],
        out_specs=pl.BlockSpec((1, tile_n, nkp), lambda i: (i, 0, 0)),
        compiler_params=pltpu.CompilerParams(
            dimension_semantics=("parallel",),
            vmem_limit_bytes=32 * 1024 * 1024,   # ample headroom, even on v7x
        ),
    )(x_p, band, cb, hw_pad, hb_pad)

    logits = out.reshape(n_pad, nkp)[:n, :nk]
    # SelaModel.forward returns a list of per-head outputs.
    return [logits[:, i * k:(i + 1) * k] for i in range(nhc)]


# ----------------------------------------------------------------------------
# Reference + demo
# ----------------------------------------------------------------------------
def make_params(key, c_in=4, oc=32, nhc=3, n_classes=10):
    ks = jax.random.split(key, 4)
    conv_w = jax.random.normal(ks[0], (oc, c_in, 3, 3), jnp.float32) * 0.1
    conv_b = jax.random.normal(ks[1], (oc,), jnp.float32) * 0.01
    head_w = jax.random.normal(ks[2], (nhc, oc, n_classes), jnp.float32) * 0.1
    head_b = jax.random.normal(ks[3], (nhc, 1, n_classes), jnp.float32) * 0.01
    return {"conv_w": conv_w, "conv_b": conv_b, "head_w": head_w, "head_b": head_b}


def reference_forward(x_nchw, params):
    conv_w, conv_b = params["conv_w"], params["conv_b"]
    head_w, head_b = params["head_w"], params["head_b"]
    y = lax.conv_general_dilated(
        x_nchw, conv_w, window_strides=(1, 1), padding="SAME",
        dimension_numbers=("NCHW", "OIHW", "NCHW"))
    y = jnp.maximum(y + conv_b[None, :, None, None], 0.0)
    feats = jnp.mean(y, axis=(2, 3))                           # [N, OC]
    return [feats @ head_w[i] + head_b[i] for i in range(head_w.shape[0])]


if __name__ == "__main__":
    key = jax.random.PRNGKey(0)
    k_x, k_p = jax.random.split(key)
    x = jax.random.normal(k_x, (2, 4, 16, 16), jnp.float32)    # NCHW, like PyTorch
    params = make_params(k_p)

    outs = sela_forward(x, params)
    outs = [jax.block_until_ready(o) for o in outs]

    refs = reference_forward(x, params)
    for o, r in zip(outs, refs):
        assert o.shape == r.shape, (o.shape, r.shape)
        # bf16 matmul operands (f32 accumulation) -> slightly relaxed tolerance.
        assert jnp.allclose(o, r, atol=5e-3, rtol=5e-3), "mismatch vs reference"

    print("KERNEL_OK")
</pallas_src>

<mosaic_0001>
module attributes {stable_mosaic.version = 11 : i64} {
  func.func @_sela_fused_kernel(%arg0: i32, %arg1: memref<16x216xbf16, #tpu.memory_space<vmem>>, %arg2: memref<216x512xbf16, #tpu.memory_space<vmem>>, %arg3: memref<1x512xf32, #tpu.memory_space<vmem>>, %arg4: memref<512x128xf32, #tpu.memory_space<vmem>>, %arg5: memref<1x128xf32, #tpu.memory_space<vmem>>, %arg6: memref<1x1x128xf32, #tpu.memory_space<vmem>>) attributes {dimension_semantics = [#tpu.dimension_semantics<parallel>], iteration_bounds = array<i64: 2>, scalar_prefetch = 0 : i64, scratch_operands = 0 : i64, tpu.core_type = #tpu.core_type<tc>, window_params = [{transform_indices = @transform_0, window_bounds = array<i64: 16, 216>}, {pipeline_mode = #tpu.pipeline_mode<synchronous>, transform_indices = @transform_1, window_bounds = array<i64: 216, 512>}, {pipeline_mode = #tpu.pipeline_mode<synchronous>, transform_indices = @transform_2, window_bounds = array<i64: 1, 512>}, {pipeline_mode = #tpu.pipeline_mode<synchronous>, transform_indices = @transform_3, window_bounds = array<i64: 512, 128>}, {pipeline_mode = #tpu.pipeline_mode<synchronous>, transform_indices = @transform_4, window_bounds = array<i64: 1, 128>}, {transform_indices = @transform_5, window_bounds = array<i64: 1, 1, 128>}]} {
    %c0 = arith.constant 0 : index
    %c0_0 = arith.constant 0 : index
    %0 = vector.load %arg1[%c0, %c0_0] : memref<16x216xbf16, #tpu.memory_space<vmem>>, vector<16x216xbf16>
    %c0_1 = arith.constant 0 : index
    %c0_2 = arith.constant 0 : index
    %1 = vector.load %arg2[%c0_1, %c0_2] : memref<216x512xbf16, #tpu.memory_space<vmem>>, vector<216x512xbf16>
    %cst = arith.constant dense<0.000000e+00> : vector<16x512xf32>
    %2 = tpu.matmul %0, %1, %cst {dimension_numbers = #tpu.dot_dimension_numbers<[1], [0], [0], [1], [0, 0, 1, 1], [], []>} : vector<16x216xbf16>, vector<216x512xbf16>, vector<16x512xf32> -> vector<16x512xf32>
    %c0_3 = arith.constant 0 : index
    %c0_4 = arith.constant 0 : index
    %3 = vector.load %arg3[%c0_3, %c0_4] : memref<1x512xf32, #tpu.memory_space<vmem>>, vector<1x512xf32>
    %4 = vector.broadcast %3 : vector<1x512xf32> to vector<16x512xf32>
    %5 = arith.addf %2, %4 : vector<16x512xf32>
    %cst_5 = arith.constant 0.000000e+00 : f32
    %6 = vector.broadcast %cst_5 : f32 to vector<16x512xf32>
    %7 = arith.maximumf %5, %6 : vector<16x512xf32>
    %8 = vector.shape_cast %7 : vector<16x512xf32> to vector<1x16x512xf32>
    %cst_6 = arith.constant dense<0.000000e+00> : vector<1x512xf32>
    %9 = vector.multi_reduction <add>, %8, %cst_6 [1] : vector<1x16x512xf32> to vector<1x512xf32>
    %c0_7 = arith.constant 0 : index
    %c0_8 = arith.constant 0 : index
    %10 = vector.load %arg4[%c0_7, %c0_8] : memref<512x128xf32, #tpu.memory_space<vmem>>, vector<512x128xf32>
    %cst_9 = arith.constant dense<0.000000e+00> : vector<1x128xf32>
    %11 = tpu.matmul %9, %10, %cst_9 {dimension_numbers = #tpu.dot_dimension_numbers<[1], [0], [0], [1], [0, 0, 1, 1], [], []>} : vector<1x512xf32>, vector<512x128xf32>, vector<1x128xf32> -> vector<1x128xf32>
    %c0_10 = arith.constant 0 : index
    %c0_11 = arith.constant 0 : index
    %12 = vector.load %arg5[%c0_10, %c0_11] : memref<1x128xf32, #tpu.memory_space<vmem>>, vector<1x128xf32>
    %13 = arith.addf %11, %12 : vector<1x128xf32>
    %c0_12 = arith.constant 0 : index
    %c0_13 = arith.constant 0 : index
    %c0_14 = arith.constant 0 : index
    %14 = vector.load %arg6[%c0_12, %c0_13, %c0_14] : memref<1x1x128xf32, #tpu.memory_space<vmem>>, vector<1x1x128xf32>
    %15 = vector.shape_cast %14 : vector<1x1x128xf32> to vector<1x128xf32>
    %16 = vector.shape_cast %13 : vector<1x128xf32> to vector<1x1x128xf32>
    tpu.vector_store %arg6[%c0_12, %c0_13, %c0_14], %16 {strides = array<i32>} : memref<1x1x128xf32, #tpu.memory_space<vmem>>, vector<1x1x128xf32>,
    return
  }
  func.func @transform_0(%arg0: i32) -> (i32, i32) {
    %c0_i32 = arith.constant 0 : i32
    %c0_i32_0 = arith.constant 0 : i32
    return %arg0, %c0_i32 : i32, i32
  }
  func.func @transform_1(%arg0: i32) -> (i32, i32) {
    %c0_i32 = arith.constant 0 : i32
    %c0_i32_0 = arith.constant 0 : i32
    %c0_i32_1 = arith.constant 0 : i32
    return %c0_i32, %c0_i32_0 : i32, i32
  }
  func.func @transform_2(%arg0: i32) -> (i32, i32) {
    %c0_i32 = arith.constant 0 : i32
    %c0_i32_0 = arith.constant 0 : i32
    %c0_i32_1 = arith.constant 0 : i32
    return %c0_i32, %c0_i32_0 : i32, i32
  }
  func.func @transform_3(%arg0: i32) -> (i32, i32) {
    %c0_i32 = arith.constant 0 : i32
    %c0_i32_0 = arith.constant 0 : i32
    %c0_i32_1 = arith.constant 0 : i32
    return %c0_i32, %c0_i32_0 : i32, i32
  }
  func.func @transform_4(%arg0: i32) -> (i32, i32) {
    %c0_i32 = arith.constant 0 : i32
    %c0_i32_0 = arith.constant 0 : i32
    %c0_i32_1 = arith.constant 0 : i32
    return %c0_i32, %c0_i32_0 : i32, i32
  }
  func.func @transform_5(%arg0: i32) -> (i32, i32, i32) {
    %c0_i32 = arith.constant 0 : i32
    %c0_i32_0 = arith.constant 0 : i32
    %c0_i32_1 = arith.constant 0 : i32
    return %arg0, %c0_i32, %c0_i32_0 : i32, i32, i32
  }
}

</mosaic_0001>

<bundles_post_ra>
// kernel: tile.12
= control target key start
LH: loop header
LB: loop body
LE: loop exit
PB: predicated region body
PF: predicated region fallthrough
CT: control target
= control target key end

     0   :  { %s28_s0 = inlined_call_operand.vmem [shape: f32[32], index: 0, kind: input, shape index: {}]   ;;  %s29_s1 = inlined_call_operand.vmem [shape: f32[16,32], index: 1, kind: output, shape index: {}]  }
   0x1   :  { %v4_v0 = vld [vmem:[%s28_s0] ss:$0 sm:$0xff] }
   0x2   :  { %5 = vst [vmem:[%s29_s1] sm:$0xff] %v4_v0 }
   0x3   :  { %8 = vst [vmem:[%s29_s1 + $0x8] sm:$0xff] %v4_v0 }

// kernel: tile.13
= control target key start
LH: loop header
LB: loop body
LE: loop exit
PB: predicated region body
PF: predicated region fallthrough
CT: control target
= control target key end

     0   :  { %s56_s8 = smov 96   ;;  %s57_s11 = smov 32   ;;  %vm3_vm0 = vcmask 261120   ;;  %vm9_vm1 = vcmask 1048320   ;;  %vm15_vm2 = vcmask 785920   ;;  %vm21_vm3 = vcmask 523520   ;;  %s93_s0 = inlined_call_operand.vmem [shape: f32[16,32], index: 0, kind: input, shape index: {}]   ;;  %s94_s1 = inlined_call_operand.vmem [shape: f32[1,512], index: 1, kind: output, shape index: {}]  }
   0x1   :  { %v47_v0 = vld [vmem:[%s93_s0 + $0x3] ss:$4 sm:$0xf]   ;;  %v49_v1 = vld [vmem:[%s93_s0 + $0x1] ss:$4 sm:$0xf]  }
   0x2   :  { %7 = vrot.lane.b32.xlu0 %v47_v0, %s56_s8  ;;  %19 = vrot.lane.b32.xlu1 %v49_v1, %s57_s11  ;;  %v48_v2 = vld [vmem:[%s93_s0 + $0x2] ss:$4 sm:$0xf]   ;;  %s58_s14 = smov 64  }
   0x3   :  { %v2_v3 = vld [vmem:[%s93_s0] ss:$4 sm:$0xf]  }
   0x4   :  { %4 = vst.msk [vmem:[#allocation0] ss:$8 sm:$0xf] %vm3_vm0, %v2_v3  }
   0xa   :  { %13 = vrot.lane.b32.xlu0 %v48_v2, %s58_s14 }
  0x74   :  { %v8_v4 = vpop.permute.xlu0 %7   ;;  %v20_v5 = vpop.permute.xlu1 %19  }
  0x75   :  { %10 = vst.msk [vmem:[#allocation0] ss:$8 sm:$0xf] %vm9_vm1, %v8_v4  }
  0x7c   :  { %v14_v6 = vpop.permute.xlu0 %13  }
  0x7d   :  { %16 = vst.msk [vmem:[#allocation0] ss:$8 sm:$0xf] %vm15_vm2, %v14_v6  }
  0x7e   :  { %22 = vst.msk [vmem:[#allocation0] ss:$8 sm:$0xf] %vm21_vm3, %v20_v5  }
  0x85   :  { %v25_v7 = vld [vmem:[#allocation0] sm:$0x1]  ;;  %v30_v8 = vld [vmem:[#allocation0 + $0x8] sm:$0x1]  ;;  %v36_v9 = vld [vmem:[#allocation0 + $0x10] sm:$0x1] }
  0x86   :  { %28 = vst [vmem:[%s94_s1] sm:$0x1] %v25_v7  ;;  %v42_v10 = vld [vmem:[#allocation0 + $0x18] sm:$0x1] }
  0x87   :  { %50 = vst [vmem:[%s94_s1 + $0x1] sm:$0x1] %v30_v8 }
  0x88   :  { %51 = vst [vmem:[%s94_s1 + $0x2] sm:$0x1] %v36_v9 }
  0x89   :  { %52 = vst [vmem:[%s94_s1 + $0x3] sm:$0x1] %v42_v10 }

// kernel: sela_forward.1
= control target key start
LH: loop header
LB: loop body
LE: loop exit
PB: predicated region body
PF: predicated region fallthrough
CT: control target
= control target key end

     0   :  { %s1261_s18 = smov 0   ;;  %s1831_s0 = inlined_call_operand.vmem [shape: bf16[32,216], index: 0, kind: input, shape index: {}]   ;;  %s1832_s1 = inlined_call_operand.vmem [shape: bf16[216,512], index: 1, kind: input, shape index: {}]   ;;  %s1833_s2 = inlined_call_operand.vmem [shape: f32[1,512], index: 2, kind: input, shape index: {}]   ;;  %s1834_s3 = inlined_call_operand.vmem [shape: f32[512,128], index: 3, kind: input, shape index: {}]   ;;  %s1835_s4 = inlined_call_operand.vmem [shape: f32[1,128], index: 4, kind: input, shape index: {}]   ;;  %s1836_s5 = inlined_call_operand.vmem [shape: f32[2,1,128], index: 5, kind: output, shape index: {}]  }
   0x1 LB: > { %s1267_s19 = sadd.s32 4294967295, %s1229_s18   ;;  %p934_p0 = scmp.ge.s32.totalorder %s1229_s18, 1  ;;  %s1229_s18 = sphi %s1261_s18, %s15_s18  }
   0x2   : > { %p189_p1 = scmp.lt.s32.totalorder %s1229_s18, 3 }
   0x4   : > { %p190_p2 = pnand %p934_p0, %p189_p1 }
   0x5   : > { %s935_s10 = sshll.u32 (!%p190_p2), %s1267_s19, 1  ;;  %p223_p4 = scmp.lt.s32.totalorder (!%p190_p2), %s1267_s19, 1 }
   0x6   : > { %193 = sbr.rel (%p190_p2) target bundleno = 364 (0x16c), region = 40  ;;  %p1400_p3 = scmp.lt.s32.totalorder (!%p190_p2), %s935_s10, 3 }
   0xb   : > { %v1060_v0 = vld [vmem:[%s1832_s1 + $0xe0] sm:$0xf]  ;;  %v1193_v1 = vld [vmem:[%s1832_s1 + $0xec] sm:$0xf0]  ;;  %v1191_v2 = vld [vmem:[%s1832_s1 + $0xe4] sm:$0xf] }
   0xc   : > { %v1061_v3 = vor.u32 %v1193_v1, %v1060_v0  ;;  %v1062_v4 = vld [vmem:[%s1832_s1 + $0xf0] sm:$0xf0]  ;;  %v281_v5 = vld [vmem:[%s1832_s1 + $0x1a0] sm:$0xff]  ;;  %v1189_v10 = vld [vmem:[%s1832_s1 + $0xcc] sm:$0xf0]  ;;  %vm576_vm0 = vcmask 1043456  }
   0xd   : > { %v1044_v6 = vld [vmem:[%s1832_s1 + $0xc0] sm:$0xf]  ;;  %v1065_v7 = vor.u32 %v1191_v2, %v1062_v4  ;;  %v460_v8 = vunpack.c.l.b16 %v281_v5  ;;  %v461_v9 = vunpack.c.h.b16 %v281_v5  ;;  %v1187_v11 = vld [vmem:[%s1832_s1 + $0xc4] sm:$0xf]  ;;  %v1046_v12 = vld [vmem:[%s1832_s1 + $0xd0] sm:$0xf0] }
   0xe   : > { %589 = vmatpush.bf16.msra.mxu0 %v1061_v3  ;;  %v1140_v13 = vld [vmem:[%s1832_s1 + $0x180] sm:$0xf]  ;;  %v1213_v14 = vld [vmem:[%s1832_s1 + $0x18c] sm:$0xf0]  ;;  %v1045_v17 = vor.u32 %v1189_v10, %v1044_v6  ;;  %v1049_v18 = vor.u32 %v1187_v11, %v1046_v12  ;;  %v1211_v19 = vld [vmem:[%s1832_s1 + $0x184] sm:$0xf] }
   0xf   : > { %617 = vmatpush.bf16.msra.mxu2 %v1065_v7  ;;  %v516_v15 = vpack.c.b16 %v460_v8, %v460_v8  ;;  %v517_v16 = vpack.c.b16 %v461_v9, %v461_v9  ;;  %v1142_v20 = vld [vmem:[%s1832_s1 + $0x190] sm:$0xf0]  ;;  %v1028_v21 = vld [vmem:[%s1832_s1 + $0xa0] sm:$0xf]  ;;  %v1185_v22 = vld [vmem:[%s1832_s1 + $0xac] sm:$0xf0]  ;;  %v1141_v27 = vor.u32 %v1213_v14, %v1140_v13 }
  0x10   : > { %v1183_v23 = vld [vmem:[%s1832_s1 + $0xa4] sm:$0xf]  ;;  %v1030_v24 = vld [vmem:[%s1832_s1 + $0xb0] sm:$0xf0]  ;;  %v1145_v28 = vor.u32 %v1211_v19, %v1142_v20  ;;  %v1124_v29 = vld [vmem:[%s1832_s1 + $0x160] sm:$0xf]  ;;  %v1029_v31 = vor.u32 %v1185_v22, %v1028_v21 }
  0x11   : > { %v578_v25 = vsel %vm576_vm0, %v516_v15, 0  ;;  %v581_v26 = vsel %vm576_vm0, %v517_v16, 0  ;;  %v1209_v30 = vld [vmem:[%s1832_s1 + $0x16c] sm:$0xf0]  ;;  %v1033_v32 = vor.u32 %v1183_v23, %v1030_v24  ;;  %v1207_v33 = vld [vmem:[%s1832_s1 + $0x164] sm:$0xf] }
  0x12   : > { %605 = vmatpush.bf16.msra.mxu1 %v578_v25  ;;  %633 = vmatpush.bf16.msra.mxu3 %v581_v26  ;;  %v1126_v34 = vld [vmem:[%s1832_s1 + $0x170] sm:$0xf0]  ;;  %v1012_v35 = vld [vmem:[%s1832_s1 + $0x80] sm:$0xf]  ;;  %v1181_v36 = vld [vmem:[%s1832_s1 + $0x8c] sm:$0xf0]  ;;  %v1125_v39 = vor.u32 %v1209_v30, %v1124_v29 }
  0x13   : > { %590 = vmatpush.bf16.msra.mxu0 %v1045_v17  ;;  %618 = vmatpush.bf16.msra.mxu2 %v1049_v18  ;;  %v1179_v37 = vld [vmem:[%s1832_s1 + $0x84] sm:$0xf]  ;;  %v1014_v38 = vld [vmem:[%s1832_s1 + $0x90] sm:$0xf0]  ;;  %v1129_v40 = vor.u32 %v1207_v33, %v1126_v34  ;;  %v1108_v41 = vld [vmem:[%s1832_s1 + $0x140] sm:$0xf]  ;;  %v1013_v43 = vor.u32 %v1181_v36, %v1012_v35 }
  0x14   : > { %v1205_v42 = vld [vmem:[%s1832_s1 + $0x14c] sm:$0xf0]  ;;  %v1017_v44 = vor.u32 %v1179_v37, %v1014_v38  ;;  %v1203_v45 = vld [vmem:[%s1832_s1 + $0x144] sm:$0xf]  ;;  %v1110_v46 = vld [vmem:[%s1832_s1 + $0x150] sm:$0xf0] }
  0x15   : > { %v996_v47 = vld [vmem:[%s1832_s1 + $0x60] sm:$0xf]  ;;  %v1177_v48 = vld [vmem:[%s1832_s1 + $0x6c] sm:$0xf0]  ;;  %v1175_v49 = vld [vmem:[%s1832_s1 + $0x64] sm:$0xf]  ;;  %v1109_v51 = vor.u32 %v1205_v42, %v1108_v41  ;;  %v1113_v52 = vor.u32 %v1203_v45, %v1110_v46 }
  0x16   : > { %606 = vmatpush.bf16.msra.mxu1 %v1141_v27  ;;  %634 = vmatpush.bf16.msra.mxu3 %v1145_v28  ;;  %v998_v50 = vld [vmem:[%s1832_s1 + $0x70] sm:$0xf0]  ;;  %v1092_v53 = vld [vmem:[%s1832_s1 + $0x120] sm:$0xf]  ;;  %v1201_v54 = vld [vmem:[%s1832_s1 + $0x12c] sm:$0xf0]  ;;  %v997_v56 = vor.u32 %v1177_v48, %v996_v47 }
  0x17   : > { %591 = vmatpush.bf16.msra.mxu0 %v1029_v31  ;;  %619 = vmatpush.bf16.msra.mxu2 %v1033_v32  ;;  %v1199_v55 = vld [vmem:[%s1832_s1 + $0x124] sm:$0xf]  ;;  %v1001_v57 = vor.u32 %v1175_v49, %v998_v50  ;;  %v1094_v58 = vld [vmem:[%s1832_s1 + $0x130] sm:$0xf0]  ;;  %v980_v59 = vld [vmem:[%s1832_s1 + $0x40] sm:$0xf]  ;;  %v1093_v1 = vor.u32 %v1201_v54, %v1092_v53 }
  0x18   : > { %v1173_v60 = vld [vmem:[%s1832_s1 + $0x4c] sm:$0xf0]  ;;  %v1171_v61 = vld [vmem:[%s1832_s1 + $0x44] sm:$0xf]  ;;  %v982_v62 = vld [vmem:[%s1832_s1 + $0x50] sm:$0xf0]  ;;  %v1097_v2 = vor.u32 %v1199_v55, %v1094_v58 }
  0x19   : > { %v282_v63 = vld [vmem:[%s1832_s1 + $0x1a8] sm:$0xff]  ;;  %v1076_v3 = vld [vmem:[%s1832_s1 + $0x100] sm:$0xf]  ;;  %v1197_v4 = vld [vmem:[%s1832_s1 + $0x10c] sm:$0xf0]  ;;  %v981_v6 = vor.u32 %v1173_v60, %v980_v59  ;;  %v985_v7 = vor.u32 %v1171_v61, %v982_v62  ;;  %s1839_s10 = smov (!%p1400_p3, %s935_s10), 3 }
  0x1a   : > { %607 = vmatpush.bf16.msra.mxu1 %v1125_v39  ;;  %635 = vmatpush.bf16.msra.mxu3 %v1129_v40  ;;  %v462_v0 = vunpack.c.l.b16 %v282_v63  ;;  %v1195_v5 = vld [vmem:[%s1832_s1 + $0x104] sm:$0xf]  ;;  %v1078_v8 = vld [vmem:[%s1832_s1 + $0x110] sm:$0xf0]  ;;  %v964_v9 = vld [vmem:[%s1832_s1 + $0x20] sm:$0xf]  ;;  %v463_v13 = vunpack.c.h.b16 %v282_v63  ;;  %v1077_v17 = vor.u32 %v1197_v4, %v1076_v3 }
  0x1b   : > { %592 = vmatpush.bf16.msra.mxu0 %v1013_v43  ;;  %620 = vmatpush.bf16.msra.mxu2 %v1017_v44  ;;  %v1169_v10 = vld [vmem:[%s1832_s1 + $0x2c] sm:$0xf0]  ;;  %v1167_v11 = vld [vmem:[%s1832_s1 + $0x24] sm:$0xf]  ;;  %v966_v12 = vld [vmem:[%s1832_s1 + $0x30] sm:$0xf0]  ;;  %v1081_v18 = vor.u32 %v1195_v5, %v1078_v8 }
  0x1c   : > { %v1068_v14 = vld [vmem:[%s1832_s1 + $0xe8] sm:$0xf]  ;;  %v1194_v15 = vld [vmem:[%s1832_s1 + $0xf4] sm:$0xf0]  ;;  %v518_v16 = vpack.c.b16 %v462_v0, %v462_v0  ;;  %s1160_s9 = sshll.u32 %s1839_s10, 3  ;;  %v965_v21 = vor.u32 %v1169_v10, %v964_v9  ;;  %v969_v22 = vor.u32 %v1167_v11, %v966_v12  ;;  %v519_v30 = vpack.c.b16 %v463_v13, %v463_v13  ;;  %s1841_s19 = smov (!%p223_p4, %s1267_s19), 1 }
  0x1d   : > { %s221_s13 = scalar_lea.vmem %s1831_s0, %s1160_s9  ;;  %v948_v19 = vld [vmem:[%s1832_s1] sm:$0xf]  ;;  %v1165_v20 = vld [vmem:[%s1832_s1 + $0xc] sm:$0xf0]  ;;  %v1163_v25 = vld [vmem:[%s1832_s1 + $0x4] sm:$0xf]  ;;  %v1069_v26 = vor.u32 %v1194_v15, %v1068_v14  ;;  %s225_s27 = scalar_lea.vmem %s1836_s5, %s1841_s19 }
  0x1e   : > { %608 = vmatpush.bf16.msra.mxu1 %v1109_v51  ;;  %636 = vmatpush.bf16.msra.mxu3 %v1113_v52  ;;  %v1161_v23 = vld [vmem:[%s221_s13 + $0x4] sm:$0xf]  ;;  %v942_v24 = vld [vmem:[%s221_s13 + $0x8] sm:$0xf0]  ;;  %v950_v27 = vld [vmem:[%s1832_s1 + $0x10] sm:$0xf0]  ;;  %v949_v37 = vor.u32 %v1165_v20, %v948_v19 }
  0x1f   : > { %593 = vmatpush.bf16.msra.mxu0 %v997_v56  ;;  %621 = vmatpush.bf16.msra.mxu2 %v1001_v57  ;;  %v1052_v28 = vld [vmem:[%s1832_s1 + $0xc8] sm:$0xf]  ;;  %v1190_v29 = vld [vmem:[%s1832_s1 + $0xd4] sm:$0xf0]  ;;  %v584_v31 = vsel %vm576_vm0, %v518_v16, 0  ;;  %v1458_v32 = vor.u32 %v1161_v23, %v942_v24  ;;  %vm572_vm1 = vcmask 719872   ;;  %v953_v38 = vor.u32 %v1163_v25, %v950_v27 }
  0x20   : > { %v1148_v33 = vld [vmem:[%s1832_s1 + $0x188] sm:$0xf]  ;;  %v1214_v34 = vld [vmem:[%s1832_s1 + $0x194] sm:$0xf0]  ;;  %v1192_v35 = vld [vmem:[%s1832_s1 + $0xec] sm:$0xf]  ;;  %v1053_v41 = vor.u32 %v1190_v29, %v1052_v28 }
  0x21   : > { %v1070_v36 = vld [vmem:[%s1832_s1 + $0xf8] sm:$0xf0]  ;;  %v940_v39 = vld [vmem:[%s221_s13] sm:$0xf]  ;;  %v1162_v40 = vld [vmem:[%s221_s13 + $0x4] sm:$0xf0]  ;;  %v1149_v42 = vor.u32 %v1214_v34, %v1148_v33 }
  0x22   : > { %609 = vmatpush.bf16.msra.mxu1 %v1093_v1  ;;  %637 = vmatpush.bf16.msra.mxu3 %v1097_v2  ;;  %v587_v43 = vsel %vm576_vm0, %v519_v30, 0  ;;  %v1036_v44 = vld [vmem:[%s1832_s1 + $0xa8] sm:$0xf]  ;;  %v1186_v45 = vld [vmem:[%s1832_s1 + $0xb4] sm:$0xf0]  ;;  %v1073_v46 = vor.u32 %v1192_v35, %v1070_v36  ;;  %v1492_v50 = vor.u32 %v1162_v40, %v940_v39 }
  0x23   : > { %594 = vmatpush.bf16.msra.mxu0 %v981_v6  ;;  %622 = vmatpush.bf16.msra.mxu2 %v985_v7  ;;  %v1132_v47 = vld [vmem:[%s1832_s1 + $0x168] sm:$0xf]  ;;  %v1210_v48 = vld [vmem:[%s1832_s1 + $0x174] sm:$0xf0]  ;;  %v1188_v49 = vld [vmem:[%s1832_s1 + $0xcc] sm:$0xf]  ;;  %v1037_v54 = vor.u32 %v1186_v45, %v1036_v44 }
  0x24   : > { %v1054_v51 = vld [vmem:[%s1832_s1 + $0xd8] sm:$0xf0]  ;;  %v1212_v52 = vld [vmem:[%s1832_s1 + $0x18c] sm:$0xf]  ;;  %v1133_v55 = vor.u32 %v1210_v48, %v1132_v47  ;;  %v1020_v56 = vld [vmem:[%s1832_s1 + $0x88] sm:$0xf] }
  0x25   : > { %v1150_v53 = vld [vmem:[%s1832_s1 + $0x198] sm:$0xf0]  ;;  %v1182_v57 = vld [vmem:[%s1832_s1 + $0x94] sm:$0xf0]  ;;  %v1057_v58 = vor.u32 %v1188_v49, %v1054_v51  ;;  %v1116_v60 = vld [vmem:[%s1832_s1 + $0x148] sm:$0xf] }
  0x26   : > { %610 = vmatpush.bf16.msra.mxu1 %v1077_v17  ;;  %638 = vmatpush.bf16.msra.mxu3 %v1081_v18  ;;  %v1153_v59 = vor.u32 %v1212_v52, %v1150_v53  ;;  %v1206_v61 = vld [vmem:[%s1832_s1 + $0x154] sm:$0xf0]  ;;  %v1184_v62 = vld [vmem:[%s1832_s1 + $0xac] sm:$0xf]  ;;  %v1038_v63 = vld [vmem:[%s1832_s1 + $0xb8] sm:$0xf0]  ;;  %v1021_v2 = vor.u32 %v1182_v57, %v1020_v56 }
  0x27   : > { %595 = vmatpush.bf16.msra.mxu0 %v965_v21  ;;  %623 = vmatpush.bf16.msra.mxu2 %v969_v22  ;;  %v1208_v0 = vld [vmem:[%s1832_s1 + $0x16c] sm:$0xf]  ;;  %v1134_v1 = vld [vmem:[%s1832_s1 + $0x178] sm:$0xf0]  ;;  %v1117_v3 = vor.u32 %v1206_v61, %v1116_v60  ;;  %v1004_v4 = vld [vmem:[%s1832_s1 + $0x68] sm:$0xf]  ;;  %v1041_v6 = vor.u32 %v1184_v62, %v1038_v63 }
  0x28   : > { %v1178_v5 = vld [vmem:[%s1832_s1 + $0x74] sm:$0xf0]  ;;  %v1137_v7 = vor.u32 %v1208_v0, %v1134_v1  ;;  %v1100_v8 = vld [vmem:[%s1832_s1 + $0x128] sm:$0xf]  ;;  %v1180_v10 = vld [vmem:[%s1832_s1 + $0x8c] sm:$0xf] }
  0x29   : > { %1155 = vmatmul.msk.bf16.vlgmr.msra.gmra.mxu3 %vm572_vm1, %v1458_v32  ;;  %1154 = vmatmul.msk.bf16.vlgmr.msra.gmra.mxu1 %vm572_vm1, %v1458_v32  ;;  %v1202_v9 = vld [vmem:[%s1832_s1 + $0x134] sm:$0xf0]  ;;  %v1022_v11 = vld [vmem:[%s1832_s1 + $0x98] sm:$0xf0]  ;;  %v1204_v12 = vld [vmem:[%s1832_s1 + $0x14c] sm:$0xf]  ;;  %v1005_v14 = vor.u32 %v1178_v5, %v1004_v4 }
  0x2a   : > { %645 = vmatpush.bf16.msrb.mxu1 %v1069_v26  ;;  %661 = vmatpush.bf16.msrb.mxu3 %v584_v31  ;;  %v1118_v13 = vld [vmem:[%s1832_s1 + $0x158] sm:$0xf0]  ;;  %v1101_v15 = vor.u32 %v1202_v9, %v1100_v8  ;;  %v988_v16 = vld [vmem:[%s1832_s1 + $0x48] sm:$0xf]  ;;  %v1174_v17 = vld [vmem:[%s1832_s1 + $0x54] sm:$0xf0]  ;;  %v1025_v18 = vor.u32 %v1180_v10, %v1022_v11 }
  0x2b   : > { %596 = vmatpush.bf16.msra.mxu0 %v949_v37  ;;  %624 = vmatpush.bf16.msra.mxu2 %v953_v38  ;;  %v1121_v19 = vor.u32 %v1204_v12, %v1118_v13  ;;  %v1084_v20 = vld [vmem:[%s1832_s1 + $0x108] sm:$0xf]  ;;  %v1198_v21 = vld [vmem:[%s1832_s1 + $0x114] sm:$0xf0]  ;;  %v1176_v22 = vld [vmem:[%s1832_s1 + $0x6c] sm:$0xf]  ;;  %v989_v26 = vor.u32 %v1174_v17, %v988_v16 }
  0x2c   : > { %v1006_v23 = vld [vmem:[%s1832_s1 + $0x78] sm:$0xf0]  ;;  %v1200_v24 = vld [vmem:[%s1832_s1 + $0x12c] sm:$0xf]  ;;  %v1085_v27 = vor.u32 %v1198_v21, %v1084_v20  ;;  %v972_v30 = vld [vmem:[%s1832_s1 + $0x28] sm:$0xf] }
  0x2d   : > { %v1102_v25 = vld [vmem:[%s1832_s1 + $0x138] sm:$0xf0]  ;;  %v1009_v28 = vor.u32 %v1176_v22, %v1006_v23  ;;  %v1170_v31 = vld [vmem:[%s1832_s1 + $0x34] sm:$0xf0]  ;;  %v1172_v33 = vld [vmem:[%s1832_s1 + $0x4c] sm:$0xf] }
  0x2e   : > { %646 = vmatpush.bf16.msrb.mxu1 %v1053_v41  ;;  %662 = vmatpush.bf16.msrb.mxu3 %v1149_v42  ;;  %v1105_v29 = vor.u32 %v1200_v24, %v1102_v25  ;;  %v990_v34 = vld [vmem:[%s1832_s1 + $0x58] sm:$0xf0]  ;;  %v1196_v35 = vld [vmem:[%s1832_s1 + $0x10c] sm:$0xf]  ;;  %v973_v38 = vor.u32 %v1170_v31, %v972_v30  ;;  %v956_v41 = vld [vmem:[%s1832_s1 + $0x8] sm:$0xf] }
  0x2f   : > { %673 = vmatpush.bf16.msrb.mxu0 %v1073_v46  ;;  %689 = vmatpush.bf16.msrb.mxu2 %v587_v43  ;;  %v1086_v36 = vld [vmem:[%s1832_s1 + $0x118] sm:$0xf0]  ;;  %v993_v39 = vor.u32 %v1172_v33, %v990_v34  ;;  %v1166_v42 = vld [vmem:[%s1832_s1 + $0x14] sm:$0xf0]  ;;  %v1168_v43 = vld [vmem:[%s1832_s1 + $0x2c] sm:$0xf] }
  0x30   : > { %597 = vmatmul.bf16.vlgmr.msra.gmra.mxu0 %v1492_v50  ;;  %625 = vmatmul.bf16.vlgmr.msra.gmra.mxu2 %v1492_v50  ;;  %v752_v37 = vld [vmem:[%s1834_s3 + $0x78] sm:$0xff]  ;;  %v1089_v40 = vor.u32 %v1196_v35, %v1086_v36  ;;  %v957_v45 = vor.u32 %v1166_v42, %v956_v41  ;;  %v1164_v47 = vld [vmem:[%s1832_s1 + $0xc] sm:$0xf]  ;;  %v751_v51 = vld [vmem:[%s1834_s3 + $0x70] sm:$0xff] }
  0x31   : > { %v974_v44 = vld [vmem:[%s1832_s1 + $0x38] sm:$0xf0]  ;;  %v750_v52 = vld [vmem:[%s1834_s3 + $0x68] sm:$0xff]  ;;  %v763_v62 = vld [vmem:[%s1834_s3 + $0xd0] sm:$0xff] }
  0x32   : > { %647 = vmatpush.bf16.msrb.mxu1 %v1037_v54  ;;  %663 = vmatpush.bf16.msrb.mxu3 %v1133_v55  ;;  %v977_v46 = vor.u32 %v1168_v43, %v974_v44  ;;  %v958_v48 = vld [vmem:[%s1832_s1 + $0x18] sm:$0xf0]  ;;  %v767_v54 = vld [vmem:[%s1834_s3 + $0xf0] sm:$0xff]  ;;  %v766_v56 = vld [vmem:[%s1834_s3 + $0xe8] sm:$0xff] }
  0x33   : > { %674 = vmatpush.bf16.msrb.mxu0 %v1057_v58  ;;  %690 = vmatpush.bf16.msrb.mxu2 %v1153_v59  ;;  %v961_v49 = vor.u32 %v1164_v47, %v958_v48  ;;  %v768_v53 = vld [vmem:[%s1834_s3 + $0xf8] sm:$0xff]  ;;  %v747_v55 = vld [vmem:[%s1834_s3 + $0x50] sm:$0xff]  ;;  %v746_v57 = vld [vmem:[%s1834_s3 + $0x48] sm:$0xff] }
  0x34   : > { %v765_v58 = vld [vmem:[%s1834_s3 + $0xe0] sm:$0xff]  ;;  %v764_v60 = vld [vmem:[%s1834_s3 + $0xd8] sm:$0xff]  ;;  %v743_v63 = vld [vmem:[%s1834_s3 + $0x30] sm:$0xff] }
  0x35   : > { %v745_v59 = vld [vmem:[%s1834_s3 + $0x40] sm:$0xff]  ;;  %v744_v61 = vld [vmem:[%s1834_s3 + $0x38] sm:$0xff]  ;;  %v762_v0 = vld [vmem:[%s1834_s3 + $0xc8] sm:$0xff] }
  0x36   : > { %648 = vmatpush.bf16.msrb.mxu1 %v1021_v2  ;;  %664 = vmatpush.bf16.msrb.mxu3 %v1117_v3  ;;  %v742_v1 = vld [vmem:[%s1834_s3 + $0x28] sm:$0xff]  ;;  %v761_v2 = vld [vmem:[%s1834_s3 + $0xc0] sm:$0xff]  ;;  %v760_v4 = vld [vmem:[%s1834_s3 + $0xb8] sm:$0xff] }
  0x37   : > { %675 = vmatpush.bf16.msrb.mxu0 %v1041_v6  ;;  %691 = vmatpush.bf16.msrb.mxu2 %v1137_v7  ;;  %v741_v3 = vld [vmem:[%s1834_s3 + $0x20] sm:$0xff]  ;;  %v740_v5 = vld [vmem:[%s1834_s3 + $0x18] sm:$0xff]  ;;  %v759_v6 = vld [vmem:[%s1834_s3 + $0xb0] sm:$0xff] }
  0x38   : > { %v784_v7 = vld [vmem:[%s1834_s3 + $0x178] sm:$0xff]  ;;  %v739_v8 = vld [vmem:[%s1834_s3 + $0x10] sm:$0xff]  ;;  %v758_v9 = vld [vmem:[%s1834_s3 + $0xa8] sm:$0xff] }
  0x39   : > { %v783_v10 = vld [vmem:[%s1834_s3 + $0x170] sm:$0xff]  ;;  %v738_v11 = vld [vmem:[%s1834_s3 + $0x8] sm:$0xff]  ;;  %v757_v12 = vld [vmem:[%s1834_s3 + $0xa0] sm:$0xff] }
  0x3a   : > { %649 = vmatpush.bf16.msrb.mxu1 %v1005_v14  ;;  %665 = vmatpush.bf16.msrb.mxu3 %v1101_v15  ;;  %v782_v13 = vld [vmem:[%s1834_s3 + $0x168] sm:$0xff]  ;;  %v800_v14 = vld [vmem:[%s1834_s3 + $0x1f8] sm:$0xff]  ;;  %v737_v15 = vld [vmem:[%s1834_s3] sm:$0xff] }
  0x3b   : > { %676 = vmatpush.bf16.msrb.mxu0 %v1025_v18  ;;  %692 = vmatpush.bf16.msrb.mxu2 %v1121_v19  ;;  %v756_v16 = vld [vmem:[%s1834_s3 + $0x98] sm:$0xff]  ;;  %v781_v17 = vld [vmem:[%s1834_s3 + $0x160] sm:$0xff]  ;;  %v799_v18 = vld [vmem:[%s1834_s3 + $0x1f0] sm:$0xff] }
  0x3c   : > { %v1727_v19 = vld [vmem:[%s1833_s2] sm:$0xf]  ;;  %v755_v20 = vld [vmem:[%s1834_s3 + $0x90] sm:$0xff]  ;;  %v780_v21 = vld [vmem:[%s1834_s3 + $0x158] sm:$0xff] }
  0x3d   : > { %v798_v22 = vld [vmem:[%s1834_s3 + $0x1e8] sm:$0xff]  ;;  %v796_v31 = vld [vmem:[%s1834_s3 + $0x1d8] sm:$0xff]  ;;  %v777_v33 = vld [vmem:[%s1834_s3 + $0x140] sm:$0xff] }
  0x3e   : > { %650 = vmatpush.bf16.msrb.mxu1 %v989_v26  ;;  %666 = vmatpush.bf16.msrb.mxu3 %v1085_v27  ;;  %v754_v25 = vld [vmem:[%s1834_s3 + $0x88] sm:$0xff]  ;;  %v779_v26 = vld [vmem:[%s1834_s3 + $0x150] sm:$0xff]  ;;  %v285_v27 = vperm.slane %v1727_v19, 0 }
  0x3f   : > { %677 = vmatpush.bf16.msrb.mxu0 %v1009_v28  ;;  %693 = vmatpush.bf16.msrb.mxu2 %v1105_v29  ;;  %v797_v28 = vld [vmem:[%s1834_s3 + $0x1e0] sm:$0xff]  ;;  %v778_v30 = vld [vmem:[%s1834_s3 + $0x148] sm:$0xff]  ;;  %v795_v35 = vld [vmem:[%s1834_s3 + $0x1d0] sm:$0xff] }
  0x40   : > { %v753_v29 = vld [vmem:[%s1834_s3 + $0x80] sm:$0xff]  ;;  %v775_v42 = vld [vmem:[%s1834_s3 + $0x130] sm:$0xff]  ;;  %v774_v47 = vld [vmem:[%s1834_s3 + $0x128] sm:$0xff] }
  0x41   : > { %1156 = vmatmul.msk.bf16.vlgmr.msrb.gmra.mxu3 %vm572_vm1, %v1458_v32 }
  0x42   : > { %802 = vmatpush.msra.mxu3 %v752_v37  ;;  %651 = vmatpush.bf16.msrb.mxu1 %v973_v38  ;;  %v776_v38 = vld [vmem:[%s1834_s3 + $0x138] sm:$0xff] }
  0x43   : > { %678 = vmatpush.bf16.msrb.mxu0 %v993_v39  ;;  %694 = vmatpush.bf16.msrb.mxu2 %v1089_v40  ;;  %v286_v39 = vperm.slane %v1727_v19, 1  ;;  %v794_v40 = vld [vmem:[%s1834_s3 + $0x1c8] sm:$0xff] }
  0x44   : > { %803 = vmatpush.msra.mxu3 %v751_v51  ;;  %v792_v51 = vld [vmem:[%s1834_s3 + $0x1b8] sm:$0xff] }
  0x46   : > { %652 = vmatpush.bf16.msrb.mxu1 %v957_v45  ;;  %1157 = vmatmul.msk.bf16.vlgmr.msrb.gmra.mxu2 %vm572_vm1, %v1458_v32  ;;  %v749_v32 = vld [vmem:[%s1834_s3 + $0x60] sm:$0xff] }
  0x47   : > { %679 = vmatpush.bf16.msrb.mxu0 %v977_v46  ;;  %804 = vmatpush.msra.mxu3 %v750_v52  ;;  %v793_v45 = vld [vmem:[%s1834_s3 + $0x1c0] sm:$0xff] }
  0x48   : > { %842 = vmatpush.msra.mxu2 %v784_v7  ;;  %v773_v52 = vld [vmem:[%s1834_s3 + $0x120] sm:$0xff] }
  0x49   : > { %653 = vmatmul.bf16.vlgmr.msrb.gmra.mxu1 %v1492_v50  ;;  %805 = vmatpush.msra.mxu3 %v749_v32 }
  0x4a   : > { %822 = vmatpush.msra.mxu1 %v768_v53  ;;  %843 = vmatpush.msra.mxu2 %v783_v10  ;;  %v786_v10 = vld [vmem:[%s1834_s3 + $0x188] sm:$0xff] }
  0x4b   : > { %680 = vmatpush.bf16.msrb.mxu0 %v961_v49 }
  0x4c   : > { %823 = vmatpush.msra.mxu1 %v767_v54  ;;  %844 = vmatpush.msra.mxu2 %v782_v13  ;;  %v785_v13 = vld [vmem:[%s1834_s3 + $0x180] sm:$0xff] }
  0x4e   : > { %681 = vmatmul.bf16.vlgmr.msrb.gmra.mxu0 %v1492_v50  ;;  %v748_v50 = vld [vmem:[%s1834_s3 + $0x58] sm:$0xff]  ;;  %824 = vmatpush.msra.mxu1 %v766_v56 }
  0x4f   : > { %806 = vmatpush.msra.mxu3 %v748_v50  ;;  %862 = vmatpush.msra.mxu0 %v800_v14  ;;  %v791_v50 = vld [vmem:[%s1834_s3 + $0x1b0] sm:$0xff] }
  0x50   : > { %825 = vmatpush.msra.mxu1 %v765_v58  ;;  %845 = vmatpush.msra.mxu2 %v781_v17 }
  0x51   : > { %807 = vmatpush.msra.mxu3 %v747_v55  ;;  %863 = vmatpush.msra.mxu0 %v799_v18  ;;  %v772_v55 = vld [vmem:[%s1834_s3 + $0x118] sm:$0xff]  ;;  %v287_v18 = vperm.slane %v1727_v19, 2 }
  0x52   : > { %826 = vmatpush.msra.mxu1 %v764_v60  ;;  %846 = vmatpush.msra.mxu2 %v780_v21 }
  0x53   : > { %808 = vmatpush.msra.mxu3 %v746_v57  ;;  %864 = vmatpush.msra.mxu0 %v798_v22 }
  0x54   : > { %827 = vmatpush.msra.mxu1 %v763_v62  ;;  %847 = vmatpush.msra.mxu2 %v779_v26  ;;  %v288_v26 = vperm.slane %v1727_v19, 3 }
  0x55   : > { %809 = vmatpush.msra.mxu3 %v745_v59  ;;  %865 = vmatpush.msra.mxu0 %v797_v28  ;;  %v790_v59 = vld [vmem:[%s1834_s3 + $0x1a8] sm:$0xff] }
  0x56   : > { %828 = vmatpush.msra.mxu1 %v762_v0  ;;  %848 = vmatpush.msra.mxu2 %v778_v30  ;;  %v789_v0 = vld [vmem:[%s1834_s3 + $0x1a0] sm:$0xff] }
  0x57   : > { %810 = vmatpush.msra.mxu3 %v744_v61  ;;  %866 = vmatpush.msra.mxu0 %v796_v31  ;;  %v771_v61 = vld [vmem:[%s1834_s3 + $0x110] sm:$0xff] }
  0x58   : > { %829 = vmatpush.msra.mxu1 %v761_v2  ;;  %849 = vmatpush.msra.mxu2 %v777_v33 }
  0x59   : > { %811 = vmatpush.msra.mxu3 %v743_v63  ;;  %867 = vmatpush.msra.mxu0 %v795_v35 }
  0x5a   : > { %830 = vmatpush.msra.mxu1 %v760_v4  ;;  %850 = vmatpush.msra.mxu2 %v776_v38 }
  0x5b   : > { %812 = vmatpush.msra.mxu3 %v742_v1  ;;  %868 = vmatpush.msra.mxu0 %v794_v40  ;;  %v770_v1 = vld [vmem:[%s1834_s3 + $0x108] sm:$0xff] }
  0x5c   : > { %831 = vmatpush.msra.mxu1 %v759_v6  ;;  %851 = vmatpush.msra.mxu2 %v775_v42  ;;  %v769_v6 = vld [vmem:[%s1834_s3 + $0x100] sm:$0xff] }
  0x5d   : > { %813 = vmatpush.msra.mxu3 %v741_v3  ;;  %869 = vmatpush.msra.mxu0 %v793_v45 }
  0x5e   : > { %832 = vmatpush.msra.mxu1 %v758_v9  ;;  %852 = vmatpush.msra.mxu2 %v774_v47  ;;  %v787_v9 = vld [vmem:[%s1834_s3 + $0x190] sm:$0xff] }
  0x5f   : > { %814 = vmatpush.msra.mxu3 %v740_v5  ;;  %870 = vmatpush.msra.mxu0 %v792_v51  ;;  %v788_v5 = vld [vmem:[%s1834_s3 + $0x198] sm:$0xff] }
  0x60   : > { %833 = vmatpush.msra.mxu1 %v757_v12  ;;  %853 = vmatpush.msra.mxu2 %v773_v52 }
  0x61   : > { %815 = vmatpush.msra.mxu3 %v739_v8  ;;  %871 = vmatpush.msra.mxu0 %v791_v50 }
  0x62   : > { %834 = vmatpush.msra.mxu1 %v756_v16  ;;  %854 = vmatpush.msra.mxu2 %v772_v55 }
  0x63   : > { %816 = vmatpush.msra.mxu3 %v738_v11  ;;  %872 = vmatpush.msra.mxu0 %v790_v59 }
  0x64   : > { %835 = vmatpush.msra.mxu1 %v755_v20  ;;  %855 = vmatpush.msra.mxu2 %v771_v61 }
  0x65   : > { %817 = vmatpush.msra.mxu3 %v737_v15  ;;  %873 = vmatpush.msra.mxu0 %v789_v0 }
  0x66   : > { %836 = vmatpush.msra.mxu1 %v754_v25  ;;  %856 = vmatpush.msra.mxu2 %v770_v1 }
  0x67   : > { %874 = vmatpush.msra.mxu0 %v788_v5 }
  0x68   : > { %837 = vmatpush.msra.mxu1 %v753_v29  ;;  %857 = vmatpush.msra.mxu2 %v769_v6 }
  0x69   : > { %875 = vmatpush.msra.mxu0 %v787_v9 }
  0x6b   : > { %876 = vmatpush.msra.mxu0 %v786_v10 }
  0x6d   : > { %877 = vmatpush.msra.mxu0 %v785_v13 }
  0xa6   : > { %v612_v24 = vpop.f32.mrf.mxu1 }
  0xac   : > { %v640_v36 = vpop.f32.mrf.mxu3 }
  0xad   : > { %v598_v23 = vpop.f32.mrf.mxu0 }
  0xae   : > { %v599_v34 = vadd.f32 %v598_v23, %v285_v27  ;;  %v614_v46 = vpop.f32.mrf.mxu1 }
  0xb0   : > { %v613_v43 = vadd.f32 %v612_v24, %v599_v34 }
  0xb2   : > { %v701_v32 = vmax.f32 %v613_v43, 0.0 }
  0xb3   : > { %v626_v37 = vpop.f32.mrf.mxu2 }
  0xb4   : > { %v627_v48 = vadd.f32 %v626_v37, %v286_v39  ;;  %v642_v60 = vpop.f32.mrf.mxu3 }
  0xb5   : > { %v600_v41 = vpop.f32.mrf.mxu0 }
  0xb6   : > { %v601_v44 = vadd.f32 %v600_v41, %v285_v27  ;;  %v641_v56 = vadd.f32 %v640_v36, %v627_v48 }
  0xb8   : > { %v615_v49 = vadd.f32 %v614_v46, %v601_v44  ;;  %v702_v2 = vmax.f32 %v641_v56, 0.0 }
  0xba   : > { %v705_v53 = vmax.f32 %v615_v49, 0.0 }
  0xbb   : > { %v628_v54 = vpop.f32.mrf.mxu2 }
  0xbc   : > { %v709_v57 = vadd.f32 %v705_v53, %v701_v32  ;;  %v629_v58 = vadd.f32 %v628_v54, %v286_v39 }
  0xbe   : > { %v710_v62 = vrot.slane %v709_v57, 4  ;;  %v643_v63 = vadd.f32 %v642_v60, %v629_v58 }
  0xc0   : > { %v711_v3 = vadd.f32 %v710_v62, %v709_v57  ;;  %v706_v4 = vmax.f32 %v643_v63, 0.0  ;;  %v801_v57 = vld [vmem:[%s1835_s4] sm:$0x1] }
  0xc2   : > { %v712_v7 = vrot.slane %v711_v3, 2  ;;  %v716_v8 = vadd.f32 %v706_v4, %v702_v2 }
  0xc4   : > { %v713_v11 = vadd.f32 %v712_v7, %v711_v3  ;;  %v717_v12 = vrot.slane %v716_v8, 4  ;;  %v668_v16 = vpop.f32.mrf.mxu3 }
  0xc6   : > { %v714_v14 = vrot.slane %v713_v11, 1  ;;  %v718_v15 = vadd.f32 %v717_v12, %v716_v8  ;;  %v654_v17 = vpop.f32.mrf.mxu1 }
  0xc7   : > { %v655_v23 = vadd.f32 %v654_v17, %v287_v18 }
  0xc8   : > { %v719_v20 = vrot.slane %v718_v15, 2  ;;  %v715_v21 = vadd.f32 %v714_v14, %v713_v11 }
  0xc9   : > { %v696_v24 = vpop.f32.mrf.mxu2  ;;  %v669_v30 = vadd.f32 %v668_v16, %v655_v23 }
  0xca   : > { %v720_v22 = vadd.f32 %v719_v20, %v718_v15  ;;  %818 = vmatmul.f32.vlgmr.msra.gmra.mxu3 %v715_v21 }
  0xcb   : > { %v682_v25 = vpop.f32.mrf.mxu0  ;;  %v703_v36 = vmax.f32 %v669_v30, 0.0 }
  0xcc   : > { %v721_v27 = vrot.slane %v720_v22, 1  ;;  %v683_v33 = vadd.f32 %v682_v25, %v288_v26  ;;  %v670_v34 = vpop.f32.mrf.mxu3 }
  0xce   : > { %v656_v28 = vpop.f32.mrf.mxu1  ;;  %v722_v29 = vadd.f32 %v721_v27, %v720_v22  ;;  %v697_v39 = vadd.f32 %v696_v24, %v683_v33 }
  0xcf   : > { %v657_v31 = vadd.f32 %v656_v28, %v287_v18 }
  0xd0   : > { %838 = vmatmul.f32.vlgmr.msra.gmra.mxu1 %v722_v29  ;;  %v704_v45 = vmax.f32 %v697_v39, 0.0 }
  0xd1   : > { %v671_v35 = vadd.f32 %v670_v34, %v657_v31  ;;  %v698_v42 = vpop.f32.mrf.mxu2 }
  0xd3   : > { %v707_v37 = vmax.f32 %v671_v35, 0.0  ;;  %v684_v38 = vpop.f32.mrf.mxu0 }
  0xd4   : > { %v685_v40 = vadd.f32 %v684_v38, %v288_v26 }
  0xd5   : > { %v723_v41 = vadd.f32 %v707_v37, %v703_v36 }
  0xd6   : > { %v699_v43 = vadd.f32 %v698_v42, %v685_v40 }
  0xd7   : > { %v724_v44 = vrot.slane %v723_v41, 4 }
  0xd8   : > { %v708_v19 = vmax.f32 %v699_v43, 0.0 }
  0xd9   : > { %v725_v46 = vadd.f32 %v724_v44, %v723_v41 }
  0xda   : > { %v730_v47 = vadd.f32 %v708_v19, %v704_v45 }
  0xdb   : > { %v726_v48 = vrot.slane %v725_v46, 2 }
  0xdc   : > { %v731_v49 = vrot.slane %v730_v47, 4 }
  0xdd   : > { %v727_v51 = vadd.f32 %v726_v48, %v725_v46 }
  0xde   : > { %v732_v52 = vadd.f32 %v731_v49, %v730_v47 }
  0xdf   : > { %v728_v32 = vrot.slane %v727_v51, 1 }
  0xe0   : > { %v733_v53 = vrot.slane %v732_v52, 2 }
  0xe1   : > { %v729_v50 = vadd.f32 %v728_v32, %v727_v51 }
  0xe2   : > { %v734_v54 = vadd.f32 %v733_v53, %v732_v52 }
  0xe3   : > { %858 = vmatmul.f32.vlgmr.msra.gmra.mxu2 %v729_v50 }
  0xe4   : > { %v735_v55 = vrot.slane %v734_v54, 1 }
  0xe6   : > { %v736_v56 = vadd.f32 %v735_v55, %v734_v54 }
  0xe8   : > { %878 = vmatmul.f32.vlgmr.msra.gmra.mxu0 %v736_v56 }
 0x14d   : > { %v819_v58 = vpop.f32.mrf.mxu3  ;;  %v839_v60 = vpop.f32.mrf.mxu1 }
 0x14e   : > { %v820_v59 = vadd.f32 %v819_v58, %v801_v57 }
 0x150   : > { %v840_v61 = vadd.f32 %v839_v60, %v820_v59 }
 0x165   : > { %v879_v0 = vpop.f32.mrf.mxu0 }
 0x166   : > { %v859_v62 = vpop.f32.mrf.mxu2 }
 0x167   : > { %v860_v63 = vadd.f32 %v859_v62, %v840_v61 }
 0x169   : > { %v880_v1 = vadd.f32 %v879_v0, %v860_v63 }
 0x16b   : > { %882 = vst [vmem:[%s225_s27] sm:$0x1] %v880_v1 }
 0x16c PF: > { %s15_s18 = sadd.s32 1, %s1229_s18  }
 0x16d   : > { %p12_p5 = scmp.ge.s32.totalorder %s15_s18, 4  }
 0x16f   :  { %14 = sbr.rel (!%p12_p5) target bundleno = 1 (0x1), region = 70 }

</bundles_post_ra>
